<compile_context>
chip_gen: v7x
topology: tpu7x:2x2x1
jax: 0.10.0
libtpu: 0.0.40
codegen_flags: <defaults>
</compile_context>

<pallas_src>
import functools

import jax
import jax.numpy as jnp
from jax.experimental import pallas as pl
from jax.experimental.pallas import tpu as pltpu


def _round_up(x: int, m: int) -> int:
    return ((x + m - 1) // m) * m


def _mlp_kernel(x_ref, w1_ref, b1_ref, w2_ref, b2_ref, o_ref, *, softmax: bool):
    x = x_ref[...]        # (TB, F) f32 — streamed batch tile
    w1 = w1_ref[...]      # (F, H)  f32 — resident
    b1 = b1_ref[...]      # (1, H)  f32 — resident
    w2 = w2_ref[...]      # (H, O)  f32 — resident
    b2 = b2_ref[...]      # (1, O)  f32 — resident

    # hidden = relu(x @ W1 + b1); full-precision f32 matmul (K=4, MXU time negligible).
    h = jnp.dot(x, w1, preferred_element_type=jnp.float32,
                precision=jax.lax.Precision.HIGHEST) + b1
    h = jnp.maximum(h, 0.0)

    # logits = h @ W2 + b2  (real O=2 lanes, no padding).
    out = jnp.dot(h, w2, preferred_element_type=jnp.float32,
                  precision=jax.lax.Precision.HIGHEST) + b2

    if softmax:
        # Exact softmax over the 2 real output columns (matches torch.nn.Softmax on dim=1).
        m = jnp.max(out, axis=-1, keepdims=True)
        e = jnp.exp(out - m)
        out = e / jnp.sum(e, axis=-1, keepdims=True)

    o_ref[...] = out.astype(o_ref.dtype)


def mlp_forward(x, w1, b1, w2, b2, *, softmax: bool = False, block_b: int = 4096):
    """x: (B, F) f32; w1: (F, H); b1: (1, H); w2: (H, O); b2: (1, O).

    Returns (B, O) f32, matching MyModel.forward.
    """
    x = x.astype(jnp.float32)
    w1 = w1.astype(jnp.float32)
    b1 = b1.astype(jnp.float32).reshape(1, -1)
    w2 = w2.astype(jnp.float32)
    b2 = b2.astype(jnp.float32).reshape(1, -1)

    B, F = x.shape
    H = w1.shape[1]
    O = w2.shape[1]

    # Batch tile: multiple of 16 (sublane-safe for f32/bf16), large to amortize the
    # per-grid-step overhead; capped by block_b so tiles stay well inside VMEM.
    TB = _round_up(min(block_b, B), 16)
    B_pad = _round_up(B, TB)

    # Only pad the batch rows when needed (no dtype pre-cast, no column padding).
    if B_pad != B:
        x_in = jnp.zeros((B_pad, F), jnp.float32).at[:B, :].set(x)
    else:
        x_in = x

    grid = (B_pad // TB,)

    kernel = functools.partial(_mlp_kernel, softmax=softmax)

    cost = pl.CostEstimate(
        flops=2 * B_pad * (F * H + H * O) + 2 * B_pad * (H + O) + B_pad * H,
        transcendentals=(B_pad * O) if softmax else 0,
        bytes_accessed=4 * (B_pad * F + F * H + H + H * O + O + B_pad * O),
    )

    out = pl.pallas_call(
        kernel,
        out_shape=jax.ShapeDtypeStruct((B_pad, O), jnp.float32),
        grid_spec=pl.GridSpec(
            grid=grid,
            in_specs=[
                pl.BlockSpec((TB, F), lambda i: (i, 0)),   # x: streamed per batch tile
                pl.BlockSpec((F, H), lambda i: (0, 0)),    # w1: resident
                pl.BlockSpec((1, H), lambda i: (0, 0)),    # b1: resident
                pl.BlockSpec((H, O), lambda i: (0, 0)),    # w2: resident
                pl.BlockSpec((1, O), lambda i: (0, 0)),    # b2: resident
            ],
            out_specs=pl.BlockSpec((TB, O), lambda i: (i, 0)),
        ),
        compiler_params=pltpu.CompilerParams(
            dimension_semantics=("parallel",),   # v7x: shard batch tiles over 2 TCs
            vmem_limit_bytes=32 * 1024 * 1024,   # safe budget on v5e/v6e/v7x
        ),
        cost_estimate=cost,
    )(x_in, w1, b1, w2, b2)

    return out[:B] if B_pad != B else out


def _ref_forward(x, w1, b1, w2, b2, softmax=False):
    h = jnp.maximum(
        jnp.dot(x, w1, precision=jax.lax.Precision.HIGHEST) + b1, 0.0)
    out = jnp.dot(h, w2, precision=jax.lax.Precision.HIGHEST) + b2
    if softmax:
        out = jax.nn.softmax(out, axis=-1)
    return out


if __name__ == "__main__":
    n_features = 4
    hidden = 20
    n_out = 2
    batch = 8

    key = jax.random.PRNGKey(0)
    kx, k1, k2, k3, k4 = jax.random.split(key, 5)

    x = jax.random.normal(kx, (batch, n_features), dtype=jnp.float32)
    lim1 = 1.0 / jnp.sqrt(n_features)
    w1 = jax.random.uniform(k1, (n_features, hidden), jnp.float32, -lim1, lim1)
    b1 = jax.random.uniform(k2, (1, hidden), jnp.float32, -lim1, lim1)
    lim2 = 1.0 / jnp.sqrt(hidden)
    w2 = jax.random.uniform(k3, (hidden, n_out), jnp.float32, -lim2, lim2)
    b2 = jax.random.uniform(k4, (1, n_out), jnp.float32, -lim2, lim2)

    # MyModel default: softmax=False
    out = jax.block_until_ready(mlp_forward(x, w1, b1, w2, b2, softmax=False))
    assert out.shape == (batch, n_out)
    ref = _ref_forward(x, w1, b1, w2, b2, softmax=False)
    assert jnp.allclose(out, ref, atol=1e-4, rtol=1e-4)

    # Also exercise the softmax=True branch of the module.
    out_sm = jax.block_until_ready(mlp_forward(x, w1, b1, w2, b2, softmax=True))
    assert out_sm.shape == (batch, n_out)
    ref_sm = _ref_forward(x, w1, b1, w2, b2, softmax=True)
    assert jnp.allclose(out_sm, ref_sm, atol=1e-4, rtol=1e-4)
    # Rows of a softmax must sum to 1.
    assert jnp.allclose(jnp.sum(out_sm, axis=-1), jnp.ones((batch,)), atol=1e-5)

    print("KERNEL_OK")
</pallas_src>

<mosaic_0001>
module attributes {stable_mosaic.version = 11 : i64} {
  func.func @_mlp_kernel(%arg0: i32, %arg1: memref<16x4xf32, #tpu.memory_space<vmem>>, %arg2: memref<4x20xf32, #tpu.memory_space<vmem>>, %arg3: memref<1x20xf32, #tpu.memory_space<vmem>>, %arg4: memref<20x2xf32, #tpu.memory_space<vmem>>, %arg5: memref<1x2xf32, #tpu.memory_space<vmem>>, %arg6: memref<16x2xf32, #tpu.memory_space<vmem>>) attributes {dimension_semantics = [#tpu.dimension_semantics<parallel>], iteration_bounds = array<i64: 1>, scalar_prefetch = 0 : i64, scratch_operands = 0 : i64, tpu.core_type = #tpu.core_type<tc>, window_params = [{transform_indices = @transform_0, window_bounds = array<i64: 16, 4>}, {pipeline_mode = #tpu.pipeline_mode<synchronous>, transform_indices = @transform_1, window_bounds = array<i64: 4, 20>}, {pipeline_mode = #tpu.pipeline_mode<synchronous>, transform_indices = @transform_2, window_bounds = array<i64: 1, 20>}, {pipeline_mode = #tpu.pipeline_mode<synchronous>, transform_indices = @transform_3, window_bounds = array<i64: 20, 2>}, {pipeline_mode = #tpu.pipeline_mode<synchronous>, transform_indices = @transform_4, window_bounds = array<i64: 1, 2>}, {transform_indices = @transform_5, window_bounds = array<i64: 16, 2>}]} {
    %c0 = arith.constant 0 : index
    %c0_0 = arith.constant 0 : index
    %0 = vector.load %arg1[%c0, %c0_0] : memref<16x4xf32, #tpu.memory_space<vmem>>, vector<16x4xf32>
    %c0_1 = arith.constant 0 : index
    %c0_2 = arith.constant 0 : index
    %1 = vector.load %arg2[%c0_1, %c0_2] : memref<4x20xf32, #tpu.memory_space<vmem>>, vector<4x20xf32>
    %c0_3 = arith.constant 0 : index
    %c0_4 = arith.constant 0 : index
    %2 = vector.load %arg3[%c0_3, %c0_4] : memref<1x20xf32, #tpu.memory_space<vmem>>, vector<1x20xf32>
    %c0_5 = arith.constant 0 : index
    %c0_6 = arith.constant 0 : index
    %3 = vector.load %arg4[%c0_5, %c0_6] : memref<20x2xf32, #tpu.memory_space<vmem>>, vector<20x2xf32>
    %c0_7 = arith.constant 0 : index
    %c0_8 = arith.constant 0 : index
    %4 = vector.load %arg5[%c0_7, %c0_8] : memref<1x2xf32, #tpu.memory_space<vmem>>, vector<1x2xf32>
    %cst = arith.constant dense<0.000000e+00> : vector<16x20xf32>
    %5 = tpu.matmul %0, %1, %cst {dimension_numbers = #tpu.dot_dimension_numbers<[1], [0], [0], [1], [0, 0, 1, 1], [], []>, precision = #tpu.contract_precision<fp32>} : vector<16x4xf32>, vector<4x20xf32>, vector<16x20xf32> -> vector<16x20xf32>
    %6 = vector.broadcast %2 : vector<1x20xf32> to vector<16x20xf32>
    %7 = arith.addf %5, %6 : vector<16x20xf32>
    %cst_9 = arith.constant 0.000000e+00 : f32
    %8 = vector.broadcast %cst_9 : f32 to vector<16x20xf32>
    %9 = arith.maximumf %7, %8 : vector<16x20xf32>
    %cst_10 = arith.constant dense<0.000000e+00> : vector<16x2xf32>
    %10 = tpu.matmul %9, %3, %cst_10 {dimension_numbers = #tpu.dot_dimension_numbers<[1], [0], [0], [1], [0, 0, 1, 1], [], []>, precision = #tpu.contract_precision<fp32>} : vector<16x20xf32>, vector<20x2xf32>, vector<16x2xf32> -> vector<16x2xf32>
    %11 = vector.broadcast %4 : vector<1x2xf32> to vector<16x2xf32>
    %12 = arith.addf %10, %11 : vector<16x2xf32>
    %c0_11 = arith.constant 0 : index
    %c0_12 = arith.constant 0 : index
    %13 = vector.load %arg6[%c0_11, %c0_12] : memref<16x2xf32, #tpu.memory_space<vmem>>, vector<16x2xf32>
    tpu.vector_store %arg6[%c0_11, %c0_12], %12 {strides = array<i32>} : memref<16x2xf32, #tpu.memory_space<vmem>>, vector<16x2xf32>,
    return
  }
  func.func @transform_0(%arg0: i32) -> (i32, i32) {
    %c0_i32 = arith.constant 0 : i32
    %c0_i32_0 = arith.constant 0 : i32
    return %arg0, %c0_i32 : i32, i32
  }
  func.func @transform_1(%arg0: i32) -> (i32, i32) {
    %c0_i32 = arith.constant 0 : i32
    %c0_i32_0 = arith.constant 0 : i32
    %c0_i32_1 = arith.constant 0 : i32
    return %c0_i32, %c0_i32_0 : i32, i32
  }
  func.func @transform_2(%arg0: i32) -> (i32, i32) {
    %c0_i32 = arith.constant 0 : i32
    %c0_i32_0 = arith.constant 0 : i32
    %c0_i32_1 = arith.constant 0 : i32
    return %c0_i32, %c0_i32_0 : i32, i32
  }
  func.func @transform_3(%arg0: i32) -> (i32, i32) {
    %c0_i32 = arith.constant 0 : i32
    %c0_i32_0 = arith.constant 0 : i32
    %c0_i32_1 = arith.constant 0 : i32
    return %c0_i32, %c0_i32_0 : i32, i32
  }
  func.func @transform_4(%arg0: i32) -> (i32, i32) {
    %c0_i32 = arith.constant 0 : i32
    %c0_i32_0 = arith.constant 0 : i32
    %c0_i32_1 = arith.constant 0 : i32
    return %c0_i32, %c0_i32_0 : i32, i32
  }
  func.func @transform_5(%arg0: i32) -> (i32, i32) {
    %c0_i32 = arith.constant 0 : i32
    %c0_i32_0 = arith.constant 0 : i32
    return %arg0, %c0_i32 : i32, i32
  }
}

</mosaic_0001>

<bundles_post_ra>
// kernel: tpu_custom_call.1
= control target key start
LH: loop header
LB: loop body
LE: loop exit
PB: predicated region body
PF: predicated region fallthrough
CT: control target
= control target key end

     0   :  { %vm41_vm0 = vcmask 1043456   ;;  %vm34_vm1 = vcmask 31744   ;;  %vm542_vm2 = vcmask 162816   ;;  %vm1067_vm3 = vcmask 15360   ;;  %s1327_s1 = inlined_call_operand.vmem [shape: f32[4,20], index: 1, kind: input, shape index: {}]   ;;  %s1328_s0 = inlined_call_operand.vmem [shape: f32[16,4], index: 0, kind: input, shape index: {}]   ;;  %s1329_s3 = inlined_call_operand.vmem [shape: f32[20,2], index: 3, kind: input, shape index: {}]   ;;  %s1330_s2 = inlined_call_operand.vmem [shape: f32[1,20], index: 2, kind: input, shape index: {}]   ;;  %s1331_s4 = inlined_call_operand.vmem [shape: f32[1,2], index: 4, kind: input, shape index: {}]   ;;  %s1332_s5 = inlined_call_operand.vmem [shape: f32[16,2], index: 5, kind: output, shape index: {}]  }
   0x1   :  { %v22_v0 = vld [vmem:[%s1327_s1] sm:$0xf]  ;;  %v21_v2 = vld [vmem:[%s1328_s0 + $0x8] sm:$0xff]  ;;  %v26_v27 = vld [vmem:[%s1329_s3 + $0x10] sm:$0xf] }
   0x2   :  { %v20_v1 = vld [vmem:[%s1328_s0] sm:$0xff]  ;;  %v43_v3 = vsel %vm41_vm0, %v22_v0, 0  ;;  %v39_v5 = vsel %vm34_vm1, %v21_v2, 0  ;;  %v25_v22 = vld [vmem:[%s1329_s3 + $0x8] sm:$0xff]  ;;  %v550_v30 = vsel %vm41_vm0, %v26_v27, 0 }
   0x3   :  { %v36_v4 = vsel %vm34_vm1, %v20_v1, 0  ;;  %v46_v6 = vand.u32 4294901760, %v43_v3  ;;  %v121_v8 = vand.u32 4294901760, %v39_v5  ;;  %v24_v21 = vld [vmem:[%s1329_s3] sm:$0xff]  ;;  %v556_v24 = vand.u32 4294901760, %v25_v22 }
   0x4   :  { %v111_v7 = vand.u32 4294901760, %v36_v4  ;;  %v553_v23 = vand.u32 4294901760, %v24_v21  ;;  %v1306_v33 = vand.u32 4294901760, %v550_v30  ;;  %v1074_v44 = vld [vmem:[%s1330_s2] ss:$0 sm:$0xff] }
   0x5   :  { %1124 = vmatprep.subr.mxu0 %v46_v6  ;;  %v133_v10 = vsub.f32 %v43_v3, %v46_v6  ;;  %v122_v11 = vsub.f32 %v39_v5, %v121_v8  ;;  %v649_v26 = vsub.f32 %v25_v22, %v556_v24  ;;  %v1075_v1 = vld [vmem:[%s1331_s4] ss:$0 sm:$0xff] }
   0x6   :  { %v112_v9 = vsub.f32 %v36_v4, %v111_v7  ;;  %1125 = vmatpush3.msra.mxu0 %v46_v6  ;;  %v642_v25 = vsub.f32 %v24_v21, %v553_v23  ;;  %v656_v36 = vsub.f32 %v550_v30, %v1306_v33  ;;  %v1208_v41 = vpack.c.bf16 %v556_v24, %v553_v23 }
   0x7   :  { %v134_v13 = vand.u32 4294901760, %v133_v10  ;;  %v123_v14 = vand.u32 4294901760, %v122_v11  ;;  %v650_v29 = vand.u32 4294901760, %v649_v26 }
   0x8   :  { %v113_v12 = vand.u32 4294901760, %v112_v9  ;;  %v643_v28 = vand.u32 4294901760, %v642_v25  ;;  %v657_v38 = vand.u32 4294901760, %v656_v36  ;;  %v1216_v42 = vpack.c.bf16 %v649_v26, %v642_v25 }
   0x9   :  { %v135_v16 = vsub.f32 %v133_v10, %v134_v13  ;;  %v124_v17 = vsub.f32 %v122_v11, %v123_v14  ;;  %v651_v32 = vsub.f32 %v649_v26, %v650_v29 }
   0xa   :  { %v114_v15 = vsub.f32 %v112_v9, %v113_v12  ;;  %v644_v31 = vsub.f32 %v642_v25, %v643_v28  ;;  %v658_v39 = vsub.f32 %v656_v36, %v657_v38  ;;  %v1224_v43 = vpack.c.bf16 %v650_v29, %v643_v28 }
   0xb   :  { %v136_v19 = vand.u32 4294901760, %v135_v16  ;;  %v125_v20 = vand.u32 4294901760, %v124_v17  ;;  %v652_v35 = vand.u32 4294901760, %v651_v32 }
   0xc   :  { %v115_v18 = vand.u32 4294901760, %v114_v15  ;;  %v645_v34 = vand.u32 4294901760, %v644_v31  ;;  %v659_v40 = vand.u32 4294901760, %v658_v39 }
   0xd   :  { %1129 = vmatprep.subr.mxu0 %v136_v19 }
   0xe   :  { %1126 = vmatprep.mubr.f32.mxu0 %v115_v18  ;;  %v1212_v37 = vpack.c.bf16 %v652_v35, %v645_v34 }
   0xf   :  { %1127 = vmatmul.mubr.f32.vlgmr.msra.gmra.mrb[0].mxu0 %v125_v20 }
  0x10   :  { %1130 = vmatpush3.msra.mxu0 %v136_v19  ;;  %1131 = vmatprep.mubr.f32.mxu0 %v111_v7 }
  0x11   :  { %1134 = vmatprep.subr.mxu0 %v133_v10  ;;  %1213 = vmatprep.subr.bf16.mxu1 %v1212_v37 }
  0x12   :  { %1215 = vmatpush3.bf16.msra.mxu1 %v1212_v37 }
  0x13   :  { %1167 = vmatprep.subr.mxu1 %v659_v40 }
  0x16   :  { %1168 = vmatpush3.msra.mxu1 %v659_v40 }
  0x17   :  { %1132 = vmatmul.mubr.f32.vlgmr.msra.gmra.mrb[0].mxu0 %v121_v8  ;;  %1217 = vmatprep.subr.bf16.mxu1 %v1216_v42 }
  0x18   :  { %1135 = vmatpush3.msra.mxu0 %v133_v10  ;;  %1136 = vmatprep.mubr.f32.mxu0 %v112_v9 }
  0x19   :  { %1139 = vmatprep.subr.mxu0 %v46_v6 }
  0x1f   :  { %1137 = vmatmul.mubr.f32.vlgmr.msra.gmra.mrb[0].mxu0 %v122_v11 }
  0x20   :  { %1140 = vmatpush3.msra.mxu0 %v46_v6  ;;  %1141 = vmatprep.mubr.f32.mxu0 %v113_v12 }
  0x21   :  { %1144 = vmatprep.subr.mxu0 %v134_v13 }
  0x27   :  { %1142 = vmatmul.mubr.f32.vlgmr.msra.gmra.mrb[0].mxu0 %v123_v14 }
  0x28   :  { %1145 = vmatpush3.msra.mxu0 %v134_v13  ;;  %1146 = vmatprep.mubr.f32.mxu0 %v111_v7 }
  0x29   :  { %1149 = vmatprep.subr.mxu0 %v46_v6 }
  0x2f   :  { %1147 = vmatmul.mubr.f32.vlgmr.msra.gmra.mrb[0].mxu0 %v121_v8 }
  0x30   :  { %1150 = vmatpush3.msra.mxu0 %v46_v6  ;;  %1151 = vmatprep.mubr.f32.mxu0 %v111_v7 }
  0x31   :  { %1209 = vmatprep.subr.bf16.mxu0 %v1208_v41 }
  0x37   :  { %1152 = vmatmul.mubr.f32.vlgmr.msra.gmra.mrb[0].mxu0 %v121_v8 }
  0x38   :  { %1211 = vmatpush3.bf16.msra.mxu0 %v1208_v41 }
  0x39   :  { %1158 = vmatprep.subr.mxu0 %v1306_v33 }
  0x3c   :  { %1159 = vmatpush3.msra.mxu0 %v1306_v33 }
 0x10a   :  { %v1153_v45 = vpop.f32.mrb[0].mxu0 }
 0x10b   :  { %v1232_v46 = vadd.f32 %v1153_v45, %v1074_v44  ;;  %v524_v47 = vpop.f32.mrb[1].mxu0 }
 0x10c   :  { %v1233_v48 = vadd.f32 %v1074_v44, %v524_v47 }
 0x10d   :  { %v535_v49 = vmax.f32 %v1232_v46, 0.0 }
 0x10e   :  { %v534_v50 = vmax.f32 %v1233_v48, 0.0 }
 0x10f   :  { %v547_v51 = vsel %vm542_vm2, %v535_v49, 0 }
 0x110   :  { %v630_v52 = vand.u32 4294901760, %v547_v51  ;;  %v544_v53 = vsel %vm542_vm2, %v534_v50, 0 }
 0x111   :  { %v620_v54 = vand.u32 4294901760, %v544_v53 }
 0x112   :  { %v631_v55 = vsub.f32 %v547_v51, %v630_v52 }
 0x113   :  { %1169 = vmatprep.mubr.f32.mxu1 %v620_v54  ;;  %v621_v56 = vsub.f32 %v544_v53, %v620_v54 }
 0x114   :  { %v632_v57 = vand.u32 4294901760, %v631_v55  ;;  %1170 = vmatmul.mubr.f32.vlgmr.msra.gmra.mrb[0].mxu1 %v630_v52 }
 0x115   :  { %1219 = vmatpush3.bf16.msra.mxu1 %v1216_v42  ;;  %1178 = vmatprep.mubr.f32.mxu1 %v621_v56  ;;  %v622_v58 = vand.u32 4294901760, %v621_v56 }
 0x116   :  { %1176 = vmatprep.subr.mxu1 %v656_v36  ;;  %v633_v59 = vsub.f32 %v631_v55, %v632_v57 }
 0x117   :  { %v623_v60 = vsub.f32 %v621_v56, %v622_v58 }
 0x118   :  { %v634_v62 = vand.u32 4294901760, %v633_v59 }
 0x119   :  { %1177 = vmatpush3.msra.mxu1 %v656_v36  ;;  %v624_v61 = vand.u32 4294901760, %v623_v60 }
 0x11a   :  { %1221 = vmatprep.subr.bf16.mxu1 %v1208_v41 }
 0x11b   :  { %1160 = vmatprep.mubr.f32.mxu0 %v624_v61 }
 0x11c   :  { %1161 = vmatmul.mubr.f32.vlgmr.msra.gmra.mrb[2].mxu0 %v634_v62  ;;  %1179 = vmatmul.mubr.f32.vlgmr.msra.gmra.mrb[0].mxu1 %v631_v55 }
 0x11d   :  { %1223 = vmatpush3.bf16.msra.mxu1 %v1208_v41  ;;  %1187 = vmatprep.mubr.f32.mxu1 %v622_v58 }
 0x11e   :  { %1185 = vmatprep.subr.mxu1 %v1306_v33 }
 0x121   :  { %1186 = vmatpush3.msra.mxu1 %v1306_v33 }
 0x122   :  { %1225 = vmatprep.subr.bf16.mxu1 %v1224_v43 }
 0x124   :  { %1188 = vmatmul.mubr.f32.vlgmr.msra.gmra.mrb[0].mxu1 %v632_v57 }
 0x125   :  { %1227 = vmatpush3.bf16.msra.mxu1 %v1224_v43  ;;  %1196 = vmatprep.mubr.f32.mxu1 %v620_v54 }
 0x126   :  { %1194 = vmatprep.subr.mxu1 %v657_v38 }
 0x129   :  { %1195 = vmatpush3.msra.mxu1 %v657_v38 }
 0x12a   :  { %1229 = vmatprep.subr.bf16.mxu1 %v1208_v41 }
 0x12c   :  { %1197 = vmatmul.mubr.f32.vlgmr.msra.gmra.mrb[0].mxu1 %v630_v52 }
 0x12d   :  { %1231 = vmatpush3.bf16.msra.mxu1 %v1208_v41  ;;  %1205 = vmatprep.mubr.f32.mxu1 %v620_v54 }
 0x12e   :  { %1203 = vmatprep.subr.mxu1 %v1306_v33 }
 0x131   :  { %1204 = vmatpush3.msra.mxu1 %v1306_v33 }
 0x134   :  { %1206 = vmatmul.mubr.f32.vlgmr.msra.gmra.mrb[0].mxu1 %v630_v52 }
 0x1ef   :  { %v1162_v63 = vpop.f32.mrb[2].mxu0 }
 0x1f0   :  { %v626_v0 = vpop.f32.mrb[3].mxu0  ;;  %v637_v2 = vadd.f32 %v1162_v63, %v1075_v1 }
 0x1f1   :  { %v627_v3 = vadd.f32 %v1075_v1, %v626_v0 }
 0x207   :  { %v1207_v4 = vpop.f32.mrb[0].mxu1 }
 0x208   :  { %v1235_v5 = vadd.f32 %v1207_v4, %v637_v2  ;;  %v1057_v6 = vpop.f32.mrb[1].mxu1 }
 0x209   :  { %v1237_v7 = vadd.f32 %v1057_v6, %v627_v3 }
 0x20a   :  { %1069 = vst.msk [vmem:[%s1332_s5 + $0x8] sm:$0xff] %vm1067_vm3, %v1235_v5 }
 0x20b   :  { %1068 = vst.msk [vmem:[%s1332_s5] sm:$0xff] %vm1067_vm3, %v1237_v7 }

</bundles_post_ra>
